<compile_context>
chip_gen: v5e
topology: v5e:2x2
jax: 0.10.0
libtpu: 0.0.40
codegen_flags: <defaults>
</compile_context>

<pallas_src>
import functools

import jax
import jax.numpy as jnp
from jax.experimental import pallas as pl
from jax.experimental.pallas import tpu as pltpu


_LN_EPS = 1e-12


def _round_up(x, m):
    return ((x + m - 1) // m) * m


# ---------------------------------------------------------------------------
# Kernel body
# ---------------------------------------------------------------------------
def _feature_resizer_kernel(x_ref, w_ref, b_ref, g_ref, beta_ref, o_ref, *,
                            c2, do_ln, mxu_dtype):
    # x_ref: (TM, C1)   w_ref: (C1, C2p)   b/g/beta: (1, C2p)   o_ref: (TM, C2p)
    x = x_ref[...]
    w = w_ref[...]
    if mxu_dtype is not None:
        # Optional reduced-precision MXU operands; accumulation stays f32.
        x = x.astype(mxu_dtype)
        w = w.astype(mxu_dtype)

    # fc: x @ W^T + b  (W stored pre-transposed and zero-padded to C2p lanes).
    y = jnp.dot(x, w, preferred_element_type=jnp.float32)
    y = y + b_ref[...].astype(jnp.float32)

    if not do_ln:
        # Dropout in eval mode is identity.
        o_ref[...] = y.astype(o_ref.dtype)
        return

    inv_c2 = jnp.float32(1.0 / c2)
    # Padded lanes of y are exactly zero (zero-padded weight columns and bias), so full-lane
    # row sums equal the sums over the real C2 features -> no lane masking needed.
    row_sum = jnp.sum(y, axis=-1, keepdims=True)
    row_sq = jnp.sum(y * y, axis=-1, keepdims=True)
    mean = row_sum * inv_c2
    var = jnp.maximum(row_sq * inv_c2 - mean * mean, 0.0)   # biased variance (PyTorch LN)
    scale = jax.lax.rsqrt(var + _LN_EPS) * g_ref[...].astype(jnp.float32)
    out = (y - mean) * scale + beta_ref[...].astype(jnp.float32)

    # Dropout in eval mode is identity.
    o_ref[...] = out.astype(o_ref.dtype)


# ---------------------------------------------------------------------------
# VMEM / tiling heuristics
# ---------------------------------------------------------------------------
def _vmem_limits():
    """(vmem_limit_bytes, row-tile cap budget) picked per TPU generation."""
    cap = None
    try:
        info = pltpu.get_tpu_info()
        cap = getattr(info, "vmem_capacity_bytes", None)
    except Exception:
        cap = None
    if cap is not None and cap <= 64 * 1024 * 1024:
        # v7x-class: only 64 MiB physical VMEM per TensorCore -> leave ~40% headroom for
        # Mosaic internal scratch, semaphores and the f32 epilogue temporaries.
        return 48 * 1024 * 1024, 28 * 1024 * 1024
    # v5e / v6e (128 MiB physical VMEM).
    return 64 * 1024 * 1024, 40 * 1024 * 1024


def _cap_row_tile(requested, c1, c2p, x_itemsize, out_itemsize, param_itemsize,
                  vmem_budget_bytes):
    """Cap the row tile so double-buffered x/out tiles + single-buffered params + f32
    epilogue temporaries fit the per-generation VMEM budget (multiple of 32 rows)."""
    per_row = 2 * c1 * x_itemsize + 2 * c2p * out_itemsize + 3 * c2p * 4
    param_bytes = (c1 * c2p + 3 * c2p) * param_itemsize      # single-buffered constants
    avail = max(vmem_budget_bytes - param_bytes, per_row * 32)
    cap = max(32, (avail // per_row) // 32 * 32)
    return max(32, min(requested, cap))


def _choose_row_tile(rows, tm_cap):
    """Final row tile: multiple of 32, <= cap, and (when there is enough work) at least
    2 grid steps so v7x's two TensorCores both get a share of the "parallel" axis."""
    tm = min(tm_cap, _round_up(rows, 32))
    if tm >= rows:
        if rows > 64:
            # Enough work for both TensorCores: split into (at least) 2 blocks.
            tm = max(32, _round_up(pl.cdiv(rows, 2), 32))
        else:
            # Tiny inputs: one exact-ish 8-aligned block.
            tm = _round_up(rows, 8)
    return tm


# ---------------------------------------------------------------------------
# Parameter preparation (hoistable / cacheable for static inference weights)
# ---------------------------------------------------------------------------
def prepare_feature_resizer_params(weight, bias, gamma=None, beta=None):
    """Transpose torch nn.Linear weight (C2, C1) -> (C1, C2) and zero-pad the feature axis of
    all parameters to a lane-dense multiple of 128.  One-time cost; reuse across calls."""
    C2, _ = weight.shape
    c2p = _round_up(C2, 128)
    w_t = weight.T
    b2d = bias.reshape(1, C2)
    g2d = (gamma if gamma is not None else jnp.ones((C2,), weight.dtype)).reshape(1, C2)
    beta2d = (beta if beta is not None else jnp.zeros((C2,), weight.dtype)).reshape(1, C2)
    if c2p != C2:
        pad = ((0, 0), (0, c2p - C2))
        w_t = jnp.pad(w_t, pad)
        b2d = jnp.pad(b2d, pad)
        g2d = jnp.pad(g2d, pad)
        beta2d = jnp.pad(beta2d, pad)
    return dict(w_t=w_t, b2d=b2d, g2d=g2d, beta2d=beta2d, c2=C2, c2p=c2p)


# ---------------------------------------------------------------------------
# pallas_call wrapper
# ---------------------------------------------------------------------------
def _build_call(x2d, w_t, b2d, g2d, beta2d, *, rows, c1, c2, c2p, tm, out_dtype,
                do_ln, mxu_dtype, vmem_limit, single_buffer_params):
    const_kwargs = {}
    if single_buffer_params:
        # Constant index_maps -> fetched once; single-buffer to reclaim the dead second copy.
        const_kwargs = dict(pipeline_mode=pl.Buffered(1))

    in_specs = [
        pl.BlockSpec((tm, c1), lambda i: (i, 0)),
        pl.BlockSpec((c1, c2p), lambda i: (0, 0), **const_kwargs),
        pl.BlockSpec((1, c2p), lambda i: (0, 0), **const_kwargs),
        pl.BlockSpec((1, c2p), lambda i: (0, 0), **const_kwargs),
        pl.BlockSpec((1, c2p), lambda i: (0, 0), **const_kwargs),
    ]
    kernel = functools.partial(_feature_resizer_kernel, c2=c2, do_ln=do_ln,
                               mxu_dtype=mxu_dtype)
    return pl.pallas_call(
        kernel,
        out_shape=jax.ShapeDtypeStruct((rows, c2p), out_dtype),
        grid=(pl.cdiv(rows, tm),),        # ragged last block handled by Pallas (no row pad)
        in_specs=in_specs,
        out_specs=pl.BlockSpec((tm, c2p), lambda i: (i, 0)),
        compiler_params=pltpu.CompilerParams(
            dimension_semantics=("parallel",),
            vmem_limit_bytes=vmem_limit,
        ),
    )(x2d, w_t, b2d, g2d, beta2d)


def feature_resizer(x, weight=None, bias=None, gamma=None, beta=None, *,
                    do_ln=True, row_tile=512, mxu_dtype=None, params=None):
    """Fused Linear + LayerNorm(eps=1e-12) + Dropout(eval) forward.

    x: (B, S, C1); weight: (C2, C1) (torch nn.Linear layout); bias/gamma/beta: (C2,).
    Alternatively pass params=prepare_feature_resizer_params(...) to reuse prepared weights.
    mxu_dtype: optional reduced-precision dtype (e.g. jnp.bfloat16) for the matmul operands.
    """
    if params is None:
        params = prepare_feature_resizer_params(weight, bias, gamma, beta)
    w_t, b2d, g2d, beta2d = params["w_t"], params["b2d"], params["g2d"], params["beta2d"]
    C2, c2p = params["c2"], params["c2p"]

    B, S, C1 = x.shape
    rows = B * S
    out_dtype = x.dtype

    vmem_limit, tile_budget = _vmem_limits()
    tm_cap = _cap_row_tile(row_tile, C1, c2p,
                           jnp.dtype(x.dtype).itemsize,
                           jnp.dtype(out_dtype).itemsize,
                           jnp.dtype(w_t.dtype).itemsize,
                           tile_budget)
    tm = _choose_row_tile(rows, tm_cap)

    x2d = x.reshape(rows, C1)             # no-copy reshape; no row padding

    call = functools.partial(
        _build_call, x2d, w_t, b2d, g2d, beta2d,
        rows=rows, c1=C1, c2=C2, c2p=c2p, tm=tm, out_dtype=out_dtype,
        do_ln=do_ln, mxu_dtype=mxu_dtype, vmem_limit=vmem_limit)
    try:
        out2d = call(single_buffer_params=True)
    except Exception:
        # Older Pallas without pipeline_mode / Buffered(1): fall back to default buffering.
        out2d = call(single_buffer_params=False)

    if c2p != C2:
        # Only needed when C2 is not a multiple of 128 (production C2 usually is).
        out2d = out2d[:, :C2]
    return out2d.reshape(B, S, C2)


# ---------------------------------------------------------------------------
# Reference + test
# ---------------------------------------------------------------------------
def _reference(x, weight, bias, gamma, beta, do_ln=True):
    y = jnp.einsum("bsc,oc->bso", x.astype(jnp.float32), weight.astype(jnp.float32))
    y = y + bias.astype(jnp.float32)
    if do_ln:
        mean = jnp.mean(y, axis=-1, keepdims=True)
        var = jnp.mean((y - mean) ** 2, axis=-1, keepdims=True)
        y = (y - mean) / jnp.sqrt(var + _LN_EPS)
        y = y * gamma.astype(jnp.float32) + beta.astype(jnp.float32)
    return y.astype(x.dtype)


if __name__ == "__main__":
    key = jax.random.PRNGKey(0)
    k_x, k_w, k_b, k_g, k_beta = jax.random.split(key, 5)

    B, S = 2, 8
    input_feat_size, output_feat_size = 32, 64   # C1 -> C2

    x = jax.random.normal(k_x, (B, S, input_feat_size), dtype=jnp.float32)
    # torch nn.Linear weight layout: (C2, C1)
    weight = jax.random.normal(k_w, (output_feat_size, input_feat_size), jnp.float32) * 0.1
    bias = jax.random.normal(k_b, (output_feat_size,), jnp.float32) * 0.05
    gamma = 1.0 + 0.1 * jax.random.normal(k_g, (output_feat_size,), jnp.float32)
    beta = 0.05 * jax.random.normal(k_beta, (output_feat_size,), jnp.float32)

    # Prepared-parameter path (hoisted transpose/pad) — the intended production usage.
    prepared = prepare_feature_resizer_params(weight, bias, gamma, beta)

    out = feature_resizer(x, params=prepared, do_ln=True)
    jax.block_until_ready(out)
    ref = _reference(x, weight, bias, gamma, beta, do_ln=True)
    assert out.shape == (B, S, output_feat_size)
    assert jnp.allclose(out, ref, atol=1e-4, rtol=1e-4), "mismatch vs reference (do_ln=True)"

    out_nl = feature_resizer(x, weight, bias, gamma, beta, do_ln=False)
    jax.block_until_ready(out_nl)
    ref_nl = _reference(x, weight, bias, gamma, beta, do_ln=False)
    assert jnp.allclose(out_nl, ref_nl, atol=1e-4, rtol=1e-4), "mismatch vs reference (do_ln=False)"

    print("KERNEL_OK")
</pallas_src>

<mosaic_0001>
module attributes {stable_mosaic.version = 11 : i64} {
  func.func @_feature_resizer_kernel(%arg0: i32, %arg1: memref<16x32xf32, #tpu.memory_space<vmem>>, %arg2: memref<32x128xf32, #tpu.memory_space<vmem>>, %arg3: memref<1x128xf32, #tpu.memory_space<vmem>>, %arg4: memref<1x128xf32, #tpu.memory_space<vmem>>, %arg5: memref<1x128xf32, #tpu.memory_space<vmem>>, %arg6: memref<16x128xf32, #tpu.memory_space<vmem>>) attributes {dimension_semantics = [#tpu.dimension_semantics<parallel>], iteration_bounds = array<i64: 1>, scalar_prefetch = 0 : i64, scratch_operands = 0 : i64, tpu.core_type = #tpu.core_type<tc>, window_params = [{transform_indices = @transform_0, window_bounds = array<i64: 16, 32>}, {pipeline_mode = #tpu.pipeline_mode<synchronous>, transform_indices = @transform_1, window_bounds = array<i64: 32, 128>}, {pipeline_mode = #tpu.pipeline_mode<synchronous>, transform_indices = @transform_2, window_bounds = array<i64: 1, 128>}, {pipeline_mode = #tpu.pipeline_mode<synchronous>, transform_indices = @transform_3, window_bounds = array<i64: 1, 128>}, {pipeline_mode = #tpu.pipeline_mode<synchronous>, transform_indices = @transform_4, window_bounds = array<i64: 1, 128>}, {transform_indices = @transform_5, window_bounds = array<i64: 16, 128>}]} {
    %c0 = arith.constant 0 : index
    %c0_0 = arith.constant 0 : index
    %0 = vector.load %arg1[%c0, %c0_0] : memref<16x32xf32, #tpu.memory_space<vmem>>, vector<16x32xf32>
    %c0_1 = arith.constant 0 : index
    %c0_2 = arith.constant 0 : index
    %1 = vector.load %arg2[%c0_1, %c0_2] : memref<32x128xf32, #tpu.memory_space<vmem>>, vector<32x128xf32>
    %cst = arith.constant dense<0.000000e+00> : vector<16x128xf32>
    %2 = tpu.matmul %0, %1, %cst {dimension_numbers = #tpu.dot_dimension_numbers<[1], [0], [0], [1], [0, 0, 1, 1], [], []>} : vector<16x32xf32>, vector<32x128xf32>, vector<16x128xf32> -> vector<16x128xf32>
    %c0_3 = arith.constant 0 : index
    %c0_4 = arith.constant 0 : index
    %3 = vector.load %arg3[%c0_3, %c0_4] : memref<1x128xf32, #tpu.memory_space<vmem>>, vector<1x128xf32>
    %4 = vector.broadcast %3 : vector<1x128xf32> to vector<16x128xf32>
    %5 = arith.addf %2, %4 : vector<16x128xf32>
    %cst_5 = arith.constant dense<0.000000e+00> : vector<16xf32>
    %6 = vector.multi_reduction <add>, %5, %cst_5 [1] : vector<16x128xf32> to vector<16xf32>
    %7 = vector.shape_cast %6 : vector<16xf32> to vector<16x1xf32>
    %8 = arith.mulf %5, %5 : vector<16x128xf32>
    %cst_6 = arith.constant dense<0.000000e+00> : vector<16xf32>
    %9 = vector.multi_reduction <add>, %8, %cst_6 [1] : vector<16x128xf32> to vector<16xf32>
    %10 = vector.shape_cast %9 : vector<16xf32> to vector<16x1xf32>
    %cst_7 = arith.constant 1.562500e-02 : f32
    %11 = vector.broadcast %cst_7 : f32 to vector<16x1xf32>
    %12 = arith.mulf %7, %11 : vector<16x1xf32>
    %cst_8 = arith.constant 1.562500e-02 : f32
    %13 = vector.broadcast %cst_8 : f32 to vector<16x1xf32>
    %14 = arith.mulf %10, %13 : vector<16x1xf32>
    %15 = arith.mulf %12, %12 : vector<16x1xf32>
    %16 = arith.subf %14, %15 : vector<16x1xf32>
    %cst_9 = arith.constant 0.000000e+00 : f32
    %17 = vector.broadcast %cst_9 : f32 to vector<16x1xf32>
    %18 = arith.maximumf %16, %17 : vector<16x1xf32>
    %cst_10 = arith.constant 9.99999996E-13 : f32
    %19 = vector.broadcast %cst_10 : f32 to vector<16x1xf32>
    %20 = arith.addf %18, %19 : vector<16x1xf32>
    %21 = math.rsqrt %20 : vector<16x1xf32>
    %c0_11 = arith.constant 0 : index
    %c0_12 = arith.constant 0 : index
    %22 = vector.load %arg4[%c0_11, %c0_12] : memref<1x128xf32, #tpu.memory_space<vmem>>, vector<1x128xf32>
    %23 = vector.broadcast %21 : vector<16x1xf32> to vector<16x128xf32>
    %24 = vector.broadcast %22 : vector<1x128xf32> to vector<16x128xf32>
    %25 = arith.mulf %23, %24 : vector<16x128xf32>
    %26 = vector.broadcast %12 : vector<16x1xf32> to vector<16x128xf32>
    %27 = arith.subf %5, %26 : vector<16x128xf32>
    %28 = arith.mulf %27, %25 : vector<16x128xf32>
    %c0_13 = arith.constant 0 : index
    %c0_14 = arith.constant 0 : index
    %29 = vector.load %arg5[%c0_13, %c0_14] : memref<1x128xf32, #tpu.memory_space<vmem>>, vector<1x128xf32>
    %30 = vector.broadcast %29 : vector<1x128xf32> to vector<16x128xf32>
    %31 = arith.addf %28, %30 : vector<16x128xf32>
    %c0_15 = arith.constant 0 : index
    %c0_16 = arith.constant 0 : index
    %32 = vector.load %arg6[%c0_15, %c0_16] : memref<16x128xf32, #tpu.memory_space<vmem>>, vector<16x128xf32>
    tpu.vector_store %arg6[%c0_15, %c0_16], %31 {strides = array<i32>} : memref<16x128xf32, #tpu.memory_space<vmem>>, vector<16x128xf32>,
    return
  }
  func.func @transform_0(%arg0: i32) -> (i32, i32) {
    %c0_i32 = arith.constant 0 : i32
    %c0_i32_0 = arith.constant 0 : i32
    return %arg0, %c0_i32 : i32, i32
  }
  func.func @transform_1(%arg0: i32) -> (i32, i32) {
    %c0_i32 = arith.constant 0 : i32
    %c0_i32_0 = arith.constant 0 : i32
    %c0_i32_1 = arith.constant 0 : i32
    return %c0_i32, %c0_i32_0 : i32, i32
  }
  func.func @transform_2(%arg0: i32) -> (i32, i32) {
    %c0_i32 = arith.constant 0 : i32
    %c0_i32_0 = arith.constant 0 : i32
    %c0_i32_1 = arith.constant 0 : i32
    return %c0_i32, %c0_i32_0 : i32, i32
  }
  func.func @transform_3(%arg0: i32) -> (i32, i32) {
    %c0_i32 = arith.constant 0 : i32
    %c0_i32_0 = arith.constant 0 : i32
    %c0_i32_1 = arith.constant 0 : i32
    return %c0_i32, %c0_i32_0 : i32, i32
  }
  func.func @transform_4(%arg0: i32) -> (i32, i32) {
    %c0_i32 = arith.constant 0 : i32
    %c0_i32_0 = arith.constant 0 : i32
    %c0_i32_1 = arith.constant 0 : i32
    return %c0_i32, %c0_i32_0 : i32, i32
  }
  func.func @transform_5(%arg0: i32) -> (i32, i32) {
    %c0_i32 = arith.constant 0 : i32
    %c0_i32_0 = arith.constant 0 : i32
    return %arg0, %c0_i32 : i32, i32
  }
}

module attributes {stable_mosaic.version = 11 : i64} {
  func.func @_feature_resizer_kernel(%arg0: i32, %arg1: memref<16x32xf32, #tpu.memory_space<vmem>>, %arg2: memref<32x128xf32, #tpu.memory_space<vmem>>, %arg3: memref<1x128xf32, #tpu.memory_space<vmem>>, %arg4: memref<1x128xf32, #tpu.memory_space<vmem>>, %arg5: memref<1x128xf32, #tpu.memory_space<vmem>>, %arg6: memref<16x128xf32, #tpu.memory_space<vmem>>) attributes {dimension_semantics = [#tpu.dimension_semantics<parallel>], iteration_bounds = array<i64: 1>, scalar_prefetch = 0 : i64, scratch_operands = 0 : i64, tpu.core_type = #tpu.core_type<tc>, window_params = [{transform_indices = @transform_0, window_bounds = array<i64: 16, 32>}, {pipeline_mode = #tpu.pipeline_mode<synchronous>, transform_indices = @transform_1, window_bounds = array<i64: 32, 128>}, {pipeline_mode = #tpu.pipeline_mode<synchronous>, transform_indices = @transform_2, window_bounds = array<i64: 1, 128>}, {pipeline_mode = #tpu.pipeline_mode<synchronous>, transform_indices = @transform_3, window_bounds = array<i64: 1, 128>}, {pipeline_mode = #tpu.pipeline_mode<synchronous>, transform_indices = @transform_4, window_bounds = array<i64: 1, 128>}, {transform_indices = @transform_5, window_bounds = array<i64: 16, 128>}]} {
    %c0 = arith.constant 0 : index
    %c0_0 = arith.constant 0 : index
    %0 = vector.load %arg1[%c0, %c0_0] : memref<16x32xf32, #tpu.memory_space<vmem>>, vector<16x32xf32>
    %c0_1 = arith.constant 0 : index
    %c0_2 = arith.constant 0 : index
    %1 = vector.load %arg2[%c0_1, %c0_2] : memref<32x128xf32, #tpu.memory_space<vmem>>, vector<32x128xf32>
    %cst = arith.constant dense<0.000000e+00> : vector<16x128xf32>
    %2 = tpu.matmul %0, %1, %cst {dimension_numbers = #tpu.dot_dimension_numbers<[1], [0], [0], [1], [0, 0, 1, 1], [], []>} : vector<16x32xf32>, vector<32x128xf32>, vector<16x128xf32> -> vector<16x128xf32>
    %c0_3 = arith.constant 0 : index
    %c0_4 = arith.constant 0 : index
    %3 = vector.load %arg3[%c0_3, %c0_4] : memref<1x128xf32, #tpu.memory_space<vmem>>, vector<1x128xf32>
    %4 = vector.broadcast %3 : vector<1x128xf32> to vector<16x128xf32>
    %5 = arith.addf %2, %4 : vector<16x128xf32>
    %cst_5 = arith.constant dense<0.000000e+00> : vector<16xf32>
    %6 = vector.multi_reduction <add>, %5, %cst_5 [1] : vector<16x128xf32> to vector<16xf32>
    %7 = vector.shape_cast %6 : vector<16xf32> to vector<16x1xf32>
    %8 = arith.mulf %5, %5 : vector<16x128xf32>
    %cst_6 = arith.constant dense<0.000000e+00> : vector<16xf32>
    %9 = vector.multi_reduction <add>, %8, %cst_6 [1] : vector<16x128xf32> to vector<16xf32>
    %10 = vector.shape_cast %9 : vector<16xf32> to vector<16x1xf32>
    %cst_7 = arith.constant 1.562500e-02 : f32
    %11 = vector.broadcast %cst_7 : f32 to vector<16x1xf32>
    %12 = arith.mulf %7, %11 : vector<16x1xf32>
    %cst_8 = arith.constant 1.562500e-02 : f32
    %13 = vector.broadcast %cst_8 : f32 to vector<16x1xf32>
    %14 = arith.mulf %10, %13 : vector<16x1xf32>
    %15 = arith.mulf %12, %12 : vector<16x1xf32>
    %16 = arith.subf %14, %15 : vector<16x1xf32>
    %cst_9 = arith.constant 0.000000e+00 : f32
    %17 = vector.broadcast %cst_9 : f32 to vector<16x1xf32>
    %18 = arith.maximumf %16, %17 : vector<16x1xf32>
    %cst_10 = arith.constant 9.99999996E-13 : f32
    %19 = vector.broadcast %cst_10 : f32 to vector<16x1xf32>
    %20 = arith.addf %18, %19 : vector<16x1xf32>
    %21 = math.rsqrt %20 : vector<16x1xf32>
    %c0_11 = arith.constant 0 : index
    %c0_12 = arith.constant 0 : index
    %22 = vector.load %arg4[%c0_11, %c0_12] : memref<1x128xf32, #tpu.memory_space<vmem>>, vector<1x128xf32>
    %23 = vector.broadcast %21 : vector<16x1xf32> to vector<16x128xf32>
    %24 = vector.broadcast %22 : vector<1x128xf32> to vector<16x128xf32>
    %25 = arith.mulf %23, %24 : vector<16x128xf32>
    %26 = vector.broadcast %12 : vector<16x1xf32> to vector<16x128xf32>
    %27 = arith.subf %5, %26 : vector<16x128xf32>
    %28 = arith.mulf %27, %25 : vector<16x128xf32>
    %c0_13 = arith.constant 0 : index
    %c0_14 = arith.constant 0 : index
    %29 = vector.load %arg5[%c0_13, %c0_14] : memref<1x128xf32, #tpu.memory_space<vmem>>, vector<1x128xf32>
    %30 = vector.broadcast %29 : vector<1x128xf32> to vector<16x128xf32>
    %31 = arith.addf %28, %30 : vector<16x128xf32>
    %c0_15 = arith.constant 0 : index
    %c0_16 = arith.constant 0 : index
    %32 = vector.load %arg6[%c0_15, %c0_16] : memref<16x128xf32, #tpu.memory_space<vmem>>, vector<16x128xf32>
    tpu.vector_store %arg6[%c0_15, %c0_16], %31 {strides = array<i32>} : memref<16x128xf32, #tpu.memory_space<vmem>>, vector<16x128xf32>,
    return
  }
  func.func @transform_0(%arg0: i32) -> (i32, i32) {
    %c0_i32 = arith.constant 0 : i32
    %c0_i32_0 = arith.constant 0 : i32
    return %arg0, %c0_i32 : i32, i32
  }
  func.func @transform_1(%arg0: i32) -> (i32, i32) {
    %c0_i32 = arith.constant 0 : i32
    %c0_i32_0 = arith.constant 0 : i32
    %c0_i32_1 = arith.constant 0 : i32
    return %c0_i32, %c0_i32_0 : i32, i32
  }
  func.func @transform_2(%arg0: i32) -> (i32, i32) {
    %c0_i32 = arith.constant 0 : i32
    %c0_i32_0 = arith.constant 0 : i32
    %c0_i32_1 = arith.constant 0 : i32
    return %c0_i32, %c0_i32_0 : i32, i32
  }
  func.func @transform_3(%arg0: i32) -> (i32, i32) {
    %c0_i32 = arith.constant 0 : i32
    %c0_i32_0 = arith.constant 0 : i32
    %c0_i32_1 = arith.constant 0 : i32
    return %c0_i32, %c0_i32_0 : i32, i32
  }
  func.func @transform_4(%arg0: i32) -> (i32, i32) {
    %c0_i32 = arith.constant 0 : i32
    %c0_i32_0 = arith.constant 0 : i32
    %c0_i32_1 = arith.constant 0 : i32
    return %c0_i32, %c0_i32_0 : i32, i32
  }
  func.func @transform_5(%arg0: i32) -> (i32, i32) {
    %c0_i32 = arith.constant 0 : i32
    %c0_i32_0 = arith.constant 0 : i32
    return %arg0, %c0_i32 : i32, i32
  }
}

</mosaic_0001>

<bundles_post_ra>
// kernel: tpu_custom_call.1
= control target key start
LH: loop header
LB: loop body
LE: loop exit
PB: predicated region body
PF: predicated region fallthrough
CT: control target
= control target key end

     0   :  { %10 = vsyncpa [#allocation3], 0  ;;  %s331_s0 = inlined_call_operand.hbm [shape: f32[16,32], index: 0, kind: input, shape index: {}]   ;;  %s332_s1 = inlined_call_operand.hbm [shape: f32[32,128], index: 1, kind: input, shape index: {}]   ;;  %s333_s2 = inlined_call_operand.vmem [shape: f32[1,128], index: 2, kind: input, shape index: {}]   ;;  %s334_s3 = inlined_call_operand.vmem [shape: f32[1,128], index: 3, kind: input, shape index: {}]   ;;  %s335_s4 = inlined_call_operand.vmem [shape: f32[1,128], index: 4, kind: input, shape index: {}]   ;;  %s336_s5 = inlined_call_operand.hbm [shape: f32[16,128], index: 5, kind: output, shape index: {}]  }
   0x1   :  { %11 = vsyncpa [#allocation6], 0 }
   0x2   :  { %12 = vsyncpa [#allocation4], 0  ;;  %s17_s20 = sshll.u32 %s331_s0, 4  ;;  %s269_s21 = smov [#allocation2]   ;;  %s18_s20 = int_to_ptr.hbm [resolvable:$true] %s17_s20 }
   0x3   :  { %s19_s22 = sshll.u32 %s269_s21, 4  ;;  %s30_s25 = sshll.u32 %s332_s1, 4  ;;  %s20_s22 = int_to_ptr.vmem [resolvable:$true] %s19_s22  ;;  %s31_s25 = int_to_ptr.hbm [resolvable:$true] %s30_s25 }
   0x4   :  { %s270_s26 = smov 128   ;;  %s271_s27 = smov 8  }
   0x5   :  { %25 = dma.hbm_to_vmem [thread:$0]  %s18_s20, 256, %s20_s22, [#allocation3], %s270_s26, %s270_s26, %s271_s27  }
   0x6   :  { %s272_s28 = smov [#allocation5]  }
   0x7   :  { %s32_s29 = sshll.u32 %s272_s28, 4  ;;  %s33_s29 = int_to_ptr.vmem [resolvable:$true] %s32_s29 }
   0x8   :  { %38 = dma.hbm_to_vmem [thread:$0]  %s31_s25, 512, %s33_s29, [#allocation6], %s270_s26, %s270_s26, %s271_s27  }
   0x9   :  { %263 = dma.done.wait [#allocation3], 256  }
   0xa   :  { %264 = vsyncadd [#allocation3], 4294967040 }
   0xb   :  { %265 = dma.done.wait [#allocation6], 512  }
   0xc   :  { %266 = vsyncadd [#allocation6], 4294966784  ;;  %v58_v0 = vld [vmem:[#allocation5 + $0x18] sm:$0xff]  ;;  %v57_v1 = vld [vmem:[#allocation5 + $0x10] sm:$0xff]  ;;  %vm63_vm0 = vcmask 261120   ;;  %s159_s11 = sshll.u32 %s336_s5, 4  ;;  %s160_s11 = int_to_ptr.hbm [resolvable:$true] %s159_s11 }
   0xd   :  { %82 = vmatpush.msra.mxu0 %v58_v0  ;;  %175 = vmatpush.msra.mxu1 %v58_v0  ;;  %v56_v2 = vld [vmem:[#allocation5 + $0x8] sm:$0xff]  ;;  %v55_v3 = vld [vmem:[#allocation5] sm:$0xff]  ;;  %v53_v4 = vld [vmem:[#allocation2] sm:$0xff] }
   0xe   :  { %v54_v5 = vld [vmem:[#allocation2 + $0x8] sm:$0xff]  ;;  %v184_v6 = vld [vmem:[%s333_s2] ss:$0 sm:$0xff] }
   0xf   :  { %83 = vmatpush.msra.mxu0 %v57_v1  ;;  %176 = vmatpush.msra.mxu1 %v57_v1  ;;  %v185_v34 = vld [vmem:[%s334_s3] ss:$0 sm:$0xff]  ;;  %s273_s3 = smov [#allocation7]  }
  0x10   :  { %v186_v42 = vld [vmem:[%s335_s4] ss:$0 sm:$0xff]  ;;  %s157_s8 = sshll.u32 %s273_s3, 4  ;;  %s158_s8 = int_to_ptr.vmem [resolvable:$true] %s157_s8 }
  0x11   :  { %84 = vmatpush.msra.mxu0 %v56_v2  ;;  %177 = vmatpush.msra.mxu1 %v56_v2 }
  0x13   :  { %85 = vmatpush.msra.mxu0 %v55_v3  ;;  %178 = vmatpush.msra.mxu1 %v55_v3 }
  0x14   :  { %173 = vmatmul.msk.f32.vlgmr.msra.gmra.mxu0 %vm63_vm0, %v53_v4  ;;  %174 = vmatmul.msk.f32.vlgmr.msra.gmra.mxu1 %vm63_vm0, %v54_v5 }
  0x91   :  { %v87_v7 = vpop.f32.mrf.mxu0  ;;  %v90_v9 = vpop.f32.mrf.mxu1 }
  0x92   :  { %v88_v8 = vadd.f32 %v184_v6, %v87_v7  ;;  %v91_v11 = vadd.f32 %v184_v6, %v90_v9 }
  0x94   :  { %93 = vadd.xlane.f32.xlu0 %v88_v8  ;;  %v97_v10 = vmul.f32 %v88_v8, %v88_v8  ;;  %v98_v12 = vmul.f32 %v91_v11, %v91_v11 }
  0x96   :  { %99 = vadd.xlane.f32.xlu1 %v97_v10 }
  0x9c   :  { %95 = vadd.xlane.f32.xlu0 %v91_v11 }
  0x9e   :  { %101 = vadd.xlane.f32.xlu1 %v98_v12 }
 0x107   :  { %v94_v13 = vpop.xlane.xlu0 %93 }
 0x108   :  { %v103_v14 = vmul.f32 0.015625, %v94_v13 }
 0x109   :  { %v100_v15 = vpop.xlane.xlu1 %99 }
 0x10a   :  { %v107_v16 = vmul.f32 %v103_v14, %v103_v14  ;;  %v105_v17 = vmul.f32 0.015625, %v100_v15  ;;  %v141_v39 = vsub.f32 %v88_v8, %v103_v14 }
 0x10c   :  { %v109_v18 = vsub.f32 %v105_v17, %v107_v16 }
 0x10e   :  { %v111_v19 = vmax.f32 %v109_v18, 0.0 }
 0x10f   :  { %v96_v20 = vpop.xlane.xlu0 %95 }
 0x110   :  { %v113_v21 = vadd.f32 1e-12, %v111_v19  ;;  %v104_v22 = vmul.f32 0.015625, %v96_v20 }
 0x111   :  { %v102_v23 = vpop.xlane.xlu1 %101 }
 0x112   :  { %187 = vrsqrt.f32 %v113_v21  ;;  %v108_v24 = vmul.f32 %v104_v22, %v104_v22  ;;  %v106_v25 = vmul.f32 0.015625, %v102_v23  ;;  %vm121_vm2 = vweird.f32 %v113_v21 }
 0x113   :  { %v142_v49 = vsub.f32 %v91_v11, %v104_v22 }
 0x114   :  { %v110_v26 = vsub.f32 %v106_v25, %v108_v24 }
 0x116   :  { %v112_v27 = vmax.f32 %v110_v26, 0.0 }
 0x118   :  { %v188_v28 = vpop.eup %187  ;;  %v114_v30 = vadd.f32 1e-12, %v112_v27 }
 0x119   :  { %v116_v29 = vmul.f32 %v188_v28, %v113_v21  ;;  %vm122_vm1 = vweird.f32 %v188_v28 }
 0x11a   :  { %189 = vrsqrt.f32 %v114_v30  ;;  %vm123_vm3 = vmor %vm121_vm2, %vm122_vm1  ;;  %vm131_vm5 = vweird.f32 %v114_v30 }
 0x11b   :  { %v117_v31 = vmul.f32 %v188_v28, %v116_v29 }
 0x11d   :  { %v118_v32 = vmul.f32 0.5, %v117_v31 }
 0x11f   :  { %v119_v33 = vsub.f32 1.5, %v118_v32 }
 0x120   :  { %v190_v35 = vpop.eup %189 }
 0x121   :  { %v120_v36 = vmul.f32 %v188_v28, %v119_v33  ;;  %v126_v37 = vmul.f32 %v190_v35, %v114_v30  ;;  %vm132_vm4 = vweird.f32 %v190_v35 }
 0x122   :  { %vm133_vm6 = vmor %vm131_vm5, %vm132_vm4 }
 0x123   :  { %v124_v38 = vsel %vm123_vm3, %v188_v28, %v120_v36  ;;  %v127_v40 = vmul.f32 %v190_v35, %v126_v37 }
 0x124   :  { %v139_v41 = vmul.f32 %v185_v34, %v124_v38 }
 0x125   :  { %v128_v43 = vmul.f32 0.5, %v127_v40 }
 0x126   :  { %v143_v44 = vmul.f32 %v141_v39, %v139_v41 }
 0x127   :  { %v129_v45 = vsub.f32 1.5, %v128_v43 }
 0x128   :  { %v149_v46 = vadd.f32 %v186_v42, %v143_v44 }
 0x129   :  { %v130_v47 = vmul.f32 %v190_v35, %v129_v45 }
 0x12a   :  { %151 = vst [vmem:[#allocation7] sm:$0xff] %v149_v46 }
 0x12b   :  { %v134_v48 = vsel %vm133_vm6, %v190_v35, %v130_v47 }
 0x12c   :  { %v140_v50 = vmul.f32 %v185_v34, %v134_v48 }
 0x12e   :  { %v144_v51 = vmul.f32 %v142_v49, %v140_v50 }
 0x130   :  { %v150_v52 = vadd.f32 %v186_v42, %v144_v51 }
 0x132   :  { %152 = vst [vmem:[#allocation7 + $0x8] sm:$0xff] %v150_v52 }
 0x133   :  { %165 = dma.vmem_to_hbm [thread:$0]  %s158_s8, 256, %s160_s11, [#allocation4], %s270_s26, %s270_s26, %s271_s27  }
 0x134   :  { %267 = dma.done.wait [#allocation4], 256  }
 0x135   :  { %268 = vsyncadd [#allocation4], 4294967040 }
 0x136   :  { %170 = vsyncpa [#allocation3], 1 }
 0x137   :  { %171 = vsyncpa [#allocation6], 1 }
 0x138   :  { %172 = vsyncpa [#allocation4], 1 }

// kernel: tpu_custom_call.1
= control target key start
LH: loop header
LB: loop body
LE: loop exit
PB: predicated region body
PF: predicated region fallthrough
CT: control target
= control target key end

     0   :  { %10 = vsyncpa [#allocation3], 0  ;;  %s331_s0 = inlined_call_operand.hbm [shape: f32[16,32], index: 0, kind: input, shape index: {}]   ;;  %s332_s1 = inlined_call_operand.hbm [shape: f32[32,128], index: 1, kind: input, shape index: {}]   ;;  %s333_s2 = inlined_call_operand.vmem [shape: f32[1,128], index: 2, kind: input, shape index: {}]   ;;  %s334_s3 = inlined_call_operand.vmem [shape: f32[1,128], index: 3, kind: input, shape index: {}]   ;;  %s335_s4 = inlined_call_operand.vmem [shape: f32[1,128], index: 4, kind: input, shape index: {}]   ;;  %s336_s5 = inlined_call_operand.hbm [shape: f32[16,128], index: 5, kind: output, shape index: {}]  }
   0x1   :  { %11 = vsyncpa [#allocation6], 0 }
   0x2   :  { %12 = vsyncpa [#allocation4], 0  ;;  %s17_s20 = sshll.u32 %s331_s0, 4  ;;  %s269_s21 = smov [#allocation2]   ;;  %s18_s20 = int_to_ptr.hbm [resolvable:$true] %s17_s20 }
   0x3   :  { %s19_s22 = sshll.u32 %s269_s21, 4  ;;  %s30_s25 = sshll.u32 %s332_s1, 4  ;;  %s20_s22 = int_to_ptr.vmem [resolvable:$true] %s19_s22  ;;  %s31_s25 = int_to_ptr.hbm [resolvable:$true] %s30_s25 }
   0x4   :  { %s270_s26 = smov 128   ;;  %s271_s27 = smov 8  }
   0x5   :  { %25 = dma.hbm_to_vmem [thread:$0]  %s18_s20, 256, %s20_s22, [#allocation3], %s270_s26, %s270_s26, %s271_s27  }
   0x6   :  { %s272_s28 = smov [#allocation5]  }
   0x7   :  { %s32_s29 = sshll.u32 %s272_s28, 4  ;;  %s33_s29 = int_to_ptr.vmem [resolvable:$true] %s32_s29 }
   0x8   :  { %38 = dma.hbm_to_vmem [thread:$0]  %s31_s25, 512, %s33_s29, [#allocation6], %s270_s26, %s270_s26, %s271_s27  }
   0x9   :  { %263 = dma.done.wait [#allocation3], 256  }
   0xa   :  { %264 = vsyncadd [#allocation3], 4294967040 }
   0xb   :  { %265 = dma.done.wait [#allocation6], 512  }
   0xc   :  { %266 = vsyncadd [#allocation6], 4294966784  ;;  %v58_v0 = vld [vmem:[#allocation5 + $0x18] sm:$0xff]  ;;  %v57_v1 = vld [vmem:[#allocation5 + $0x10] sm:$0xff]  ;;  %vm63_vm0 = vcmask 261120   ;;  %s159_s11 = sshll.u32 %s336_s5, 4  ;;  %s160_s11 = int_to_ptr.hbm [resolvable:$true] %s159_s11 }
   0xd   :  { %82 = vmatpush.msra.mxu0 %v58_v0  ;;  %175 = vmatpush.msra.mxu1 %v58_v0  ;;  %v56_v2 = vld [vmem:[#allocation5 + $0x8] sm:$0xff]  ;;  %v55_v3 = vld [vmem:[#allocation5] sm:$0xff]  ;;  %v53_v4 = vld [vmem:[#allocation2] sm:$0xff] }
   0xe   :  { %v54_v5 = vld [vmem:[#allocation2 + $0x8] sm:$0xff]  ;;  %v184_v6 = vld [vmem:[%s333_s2] ss:$0 sm:$0xff] }
   0xf   :  { %83 = vmatpush.msra.mxu0 %v57_v1  ;;  %176 = vmatpush.msra.mxu1 %v57_v1  ;;  %v185_v34 = vld [vmem:[%s334_s3] ss:$0 sm:$0xff]  ;;  %s273_s3 = smov [#allocation7]  }
  0x10   :  { %v186_v42 = vld [vmem:[%s335_s4] ss:$0 sm:$0xff]  ;;  %s157_s8 = sshll.u32 %s273_s3, 4  ;;  %s158_s8 = int_to_ptr.vmem [resolvable:$true] %s157_s8 }
  0x11   :  { %84 = vmatpush.msra.mxu0 %v56_v2  ;;  %177 = vmatpush.msra.mxu1 %v56_v2 }
  0x13   :  { %85 = vmatpush.msra.mxu0 %v55_v3  ;;  %178 = vmatpush.msra.mxu1 %v55_v3 }
  0x14   :  { %173 = vmatmul.msk.f32.vlgmr.msra.gmra.mxu0 %vm63_vm0, %v53_v4  ;;  %174 = vmatmul.msk.f32.vlgmr.msra.gmra.mxu1 %vm63_vm0, %v54_v5 }
  0x91   :  { %v87_v7 = vpop.f32.mrf.mxu0  ;;  %v90_v9 = vpop.f32.mrf.mxu1 }
  0x92   :  { %v88_v8 = vadd.f32 %v184_v6, %v87_v7  ;;  %v91_v11 = vadd.f32 %v184_v6, %v90_v9 }
  0x94   :  { %93 = vadd.xlane.f32.xlu0 %v88_v8  ;;  %v97_v10 = vmul.f32 %v88_v8, %v88_v8  ;;  %v98_v12 = vmul.f32 %v91_v11, %v91_v11 }
  0x96   :  { %99 = vadd.xlane.f32.xlu1 %v97_v10 }
  0x9c   :  { %95 = vadd.xlane.f32.xlu0 %v91_v11 }
  0x9e   :  { %101 = vadd.xlane.f32.xlu1 %v98_v12 }
 0x107   :  { %v94_v13 = vpop.xlane.xlu0 %93 }
 0x108   :  { %v103_v14 = vmul.f32 0.015625, %v94_v13 }
 0x109   :  { %v100_v15 = vpop.xlane.xlu1 %99 }
 0x10a   :  { %v107_v16 = vmul.f32 %v103_v14, %v103_v14  ;;  %v105_v17 = vmul.f32 0.015625, %v100_v15  ;;  %v141_v39 = vsub.f32 %v88_v8, %v103_v14 }
 0x10c   :  { %v109_v18 = vsub.f32 %v105_v17, %v107_v16 }
 0x10e   :  { %v111_v19 = vmax.f32 %v109_v18, 0.0 }
 0x10f   :  { %v96_v20 = vpop.xlane.xlu0 %95 }
 0x110   :  { %v113_v21 = vadd.f32 1e-12, %v111_v19  ;;  %v104_v22 = vmul.f32 0.015625, %v96_v20 }
 0x111   :  { %v102_v23 = vpop.xlane.xlu1 %101 }
 0x112   :  { %187 = vrsqrt.f32 %v113_v21  ;;  %v108_v24 = vmul.f32 %v104_v22, %v104_v22  ;;  %v106_v25 = vmul.f32 0.015625, %v102_v23  ;;  %vm121_vm2 = vweird.f32 %v113_v21 }
 0x113   :  { %v142_v49 = vsub.f32 %v91_v11, %v104_v22 }
 0x114   :  { %v110_v26 = vsub.f32 %v106_v25, %v108_v24 }
 0x116   :  { %v112_v27 = vmax.f32 %v110_v26, 0.0 }
 0x118   :  { %v188_v28 = vpop.eup %187  ;;  %v114_v30 = vadd.f32 1e-12, %v112_v27 }
 0x119   :  { %v116_v29 = vmul.f32 %v188_v28, %v113_v21  ;;  %vm122_vm1 = vweird.f32 %v188_v28 }
 0x11a   :  { %189 = vrsqrt.f32 %v114_v30  ;;  %vm123_vm3 = vmor %vm121_vm2, %vm122_vm1  ;;  %vm131_vm5 = vweird.f32 %v114_v30 }
 0x11b   :  { %v117_v31 = vmul.f32 %v188_v28, %v116_v29 }
 0x11d   :  { %v118_v32 = vmul.f32 0.5, %v117_v31 }
 0x11f   :  { %v119_v33 = vsub.f32 1.5, %v118_v32 }
 0x120   :  { %v190_v35 = vpop.eup %189 }
 0x121   :  { %v120_v36 = vmul.f32 %v188_v28, %v119_v33  ;;  %v126_v37 = vmul.f32 %v190_v35, %v114_v30  ;;  %vm132_vm4 = vweird.f32 %v190_v35 }
 0x122   :  { %vm133_vm6 = vmor %vm131_vm5, %vm132_vm4 }
 0x123   :  { %v124_v38 = vsel %vm123_vm3, %v188_v28, %v120_v36  ;;  %v127_v40 = vmul.f32 %v190_v35, %v126_v37 }
 0x124   :  { %v139_v41 = vmul.f32 %v185_v34, %v124_v38 }
 0x125   :  { %v128_v43 = vmul.f32 0.5, %v127_v40 }
 0x126   :  { %v143_v44 = vmul.f32 %v141_v39, %v139_v41 }
 0x127   :  { %v129_v45 = vsub.f32 1.5, %v128_v43 }
 0x128   :  { %v149_v46 = vadd.f32 %v186_v42, %v143_v44 }
 0x129   :  { %v130_v47 = vmul.f32 %v190_v35, %v129_v45 }
 0x12a   :  { %151 = vst [vmem:[#allocation7] sm:$0xff] %v149_v46 }
 0x12b   :  { %v134_v48 = vsel %vm133_vm6, %v190_v35, %v130_v47 }
 0x12c   :  { %v140_v50 = vmul.f32 %v185_v34, %v134_v48 }
 0x12e   :  { %v144_v51 = vmul.f32 %v142_v49, %v140_v50 }
 0x130   :  { %v150_v52 = vadd.f32 %v186_v42, %v144_v51 }
 0x132   :  { %152 = vst [vmem:[#allocation7 + $0x8] sm:$0xff] %v150_v52 }
 0x133   :  { %165 = dma.vmem_to_hbm [thread:$0]  %s158_s8, 256, %s160_s11, [#allocation4], %s270_s26, %s270_s26, %s271_s27  }
 0x134   :  { %267 = dma.done.wait [#allocation4], 256  }
 0x135   :  { %268 = vsyncadd [#allocation4], 4294967040 }
 0x136   :  { %170 = vsyncpa [#allocation3], 1 }
 0x137   :  { %171 = vsyncpa [#allocation6], 1 }
 0x138   :  { %172 = vsyncpa [#allocation4], 1 }

</bundles_post_ra>
